<compile_context>
chip_gen: v7x
topology: tpu7x:2x2x1
jax: 0.10.0
libtpu: 0.0.40
codegen_flags: <defaults>
</compile_context>

<pallas_src>
import numpy as np
import jax
import jax.numpy as jnp
from jax.experimental import pallas as pl
from jax.experimental.pallas import tpu as pltpu


_VMEM_LIMIT_BYTES = 48 * 1024 * 1024  # fits v7x's 64 MiB physical VMEM with headroom
_TM_MAX = 512                         # ~85% of HBM roofline for mem-bound tiles


# ----------------------------------------------------------------------------
# Row-tile selection: multiple of 8, capped, prefer >= 2 grid programs.
# ----------------------------------------------------------------------------
def _choose_row_tile(m):
    if m >= 2 * _TM_MAX:
        tm = _TM_MAX
    elif m > 16:
        # roughly split in half so the single grid axis has >= 2 programs (v7x megacore)
        tm = ((m + 15) // 16) * 8
    else:
        tm = max(8, ((m + 7) // 8) * 8)
    m_pad = ((m + tm - 1) // tm) * tm
    return tm, m_pad


def _pad_rows(x, m_pad):
    m = x.shape[0]
    if m_pad == m:
        return x
    return jnp.pad(x, ((0, m_pad - m), (0, 0)))


# ----------------------------------------------------------------------------
# Pallas kernel 1: per-level MLP projection   (M, K)bf16 @ (K, E)bf16 + bias(f32)
# ----------------------------------------------------------------------------
def _proj_kernel(x_ref, w_ref, b_ref, o_ref):
    acc = jnp.dot(x_ref[...], w_ref[...], preferred_element_type=jnp.float32)
    o_ref[...] = (acc + b_ref[...]).astype(o_ref.dtype)


def mlp_project(x, w, b, *, out_dtype=jnp.bfloat16):
    """x: (M, K) f32/bf16, w: (K, E) f32, b: (E,) f32 -> (M, E) out_dtype."""
    m, k = x.shape
    e = w.shape[1]
    tm, m_pad = _choose_row_tile(m)
    x_bf = _pad_rows(x, m_pad).astype(jnp.bfloat16)
    w_bf = w.astype(jnp.bfloat16)

    out = pl.pallas_call(
        _proj_kernel,
        out_shape=jax.ShapeDtypeStruct((m_pad, e), out_dtype),
        grid_spec=pltpu.PrefetchScalarGridSpec(
            num_scalar_prefetch=0,
            grid=(m_pad // tm,),
            in_specs=[
                pl.BlockSpec((tm, k), lambda i: (i, 0)),
                pl.BlockSpec((k, e), lambda i: (0, 0)),
                pl.BlockSpec((1, e), lambda i: (0, 0)),
            ],
            out_specs=pl.BlockSpec((tm, e), lambda i: (i, 0)),
        ),
        compiler_params=pltpu.CompilerParams(
            dimension_semantics=("parallel",),
            vmem_limit_bytes=_VMEM_LIMIT_BYTES,
        ),
    )(x_bf, w_bf, b.reshape(1, e).astype(jnp.float32))
    return out[:m] if m_pad != m else out


# ----------------------------------------------------------------------------
# Pallas kernel 2: linear_fuse 1x1 conv + folded BN(eval) + ReLU, concat-free.
# Four (tm, E) bf16 inputs x four (E, E) bf16 weight blocks accumulated in f32.
# ----------------------------------------------------------------------------
def _fuse_kernel(x4_ref, x3_ref, x2_ref, x1_ref,
                 w4_ref, w3_ref, w2_ref, w1_ref,
                 s_ref, b_ref, o_ref):
    acc = jnp.dot(x4_ref[...], w4_ref[...], preferred_element_type=jnp.float32)
    acc = acc + jnp.dot(x3_ref[...], w3_ref[...], preferred_element_type=jnp.float32)
    acc = acc + jnp.dot(x2_ref[...], w2_ref[...], preferred_element_type=jnp.float32)
    acc = acc + jnp.dot(x1_ref[...], w1_ref[...], preferred_element_type=jnp.float32)
    acc = acc * s_ref[...] + b_ref[...]
    o_ref[...] = jnp.maximum(acc, 0.0).astype(o_ref.dtype)


def fused_conv_bn_relu(xs, ws, scale, bias, *, out_dtype=jnp.float32):
    """xs: 4 tensors (M, E) in [c4, c3, c2, c1] order; ws: 4 weights (E, E)
    (row-slices of the original (4E, E) fuse weight in the same order)."""
    m, e = xs[0].shape
    tm, m_pad = _choose_row_tile(m)
    xs = [_pad_rows(x, m_pad).astype(jnp.bfloat16) for x in xs]
    ws = [w.astype(jnp.bfloat16) for w in ws]

    x_specs = [pl.BlockSpec((tm, e), lambda i: (i, 0)) for _ in range(4)]
    w_specs = [pl.BlockSpec((e, e), lambda i: (0, 0)) for _ in range(4)]
    v_specs = [pl.BlockSpec((1, e), lambda i: (0, 0)) for _ in range(2)]

    out = pl.pallas_call(
        _fuse_kernel,
        out_shape=jax.ShapeDtypeStruct((m_pad, e), out_dtype),
        grid_spec=pltpu.PrefetchScalarGridSpec(
            num_scalar_prefetch=0,
            grid=(m_pad // tm,),
            in_specs=x_specs + w_specs + v_specs,
            out_specs=pl.BlockSpec((tm, e), lambda i: (i, 0)),
        ),
        compiler_params=pltpu.CompilerParams(
            dimension_semantics=("parallel",),
            vmem_limit_bytes=_VMEM_LIMIT_BYTES,
        ),
    )(*xs, *ws, scale.reshape(1, e).astype(jnp.float32),
      bias.reshape(1, e).astype(jnp.float32))
    return out[:m] if m_pad != m else out


# ----------------------------------------------------------------------------
# Bilinear (align_corners=False) interpolation, matching
# F.interpolate(..., mode='bilinear', align_corners=False), as two separable
# contractions (W then H) with f32 accumulation.
# ----------------------------------------------------------------------------
def _interp_matrix(out_size, in_size):
    i = np.arange(out_size, dtype=np.float64)
    src = (i + 0.5) * (in_size / out_size) - 0.5
    src = np.clip(src, 0.0, None)
    i0 = np.minimum(np.floor(src).astype(np.int64), in_size - 1)
    i1 = np.minimum(i0 + 1, in_size - 1)
    frac = src - i0
    m = np.zeros((out_size, in_size), dtype=np.float32)
    rows = np.arange(out_size)
    m[rows, i0] = (1.0 - frac).astype(np.float32)
    m[rows, i1] += frac.astype(np.float32)
    return jnp.asarray(m)


def _bilinear_resize_nhwc(x, out_h, out_w):
    """x: (N, H, W, C) -> (N, out_h, out_w, C); keeps x.dtype on output."""
    _, h, w, _ = x.shape
    a = _interp_matrix(out_h, h)     # (out_h, h) f32
    b = _interp_matrix(out_w, w)     # (out_w, w) f32
    # TODO(synk): for very large output resolutions the resize could be folded
    # into the fuse kernel to avoid the full-resolution HBM intermediates.
    y = jnp.einsum("pW,nHWc->nHpc", b, x)    # resize along W (promotes to f32)
    y = jnp.einsum("qH,nHpc->nqpc", a, y)    # resize along H
    return y.astype(x.dtype)


# ----------------------------------------------------------------------------
# Parameters (deterministic), matching the PyTorch module layout.
# ----------------------------------------------------------------------------
def make_params(in_channels, embedding_dim, key):
    keys = jax.random.split(key, 2 * len(in_channels) + 5)
    params = {}
    for idx, c in enumerate(in_channels):
        # PyTorch Linear(c, E): weight (E, c), bias (E,). Stored transposed: (c, E).
        params[f"proj_w{idx}"] = 0.02 * jax.random.normal(
            keys[2 * idx], (c, embedding_dim), jnp.float32)
        params[f"proj_b{idx}"] = 0.01 * jax.random.normal(
            keys[2 * idx + 1], (embedding_dim,), jnp.float32)
    k = 2 * len(in_channels)
    # Conv2d(4E, E, 1, bias=False): weight (E, 4E, 1, 1). Stored as (4E, E).
    params["fuse_w"] = 0.02 * jax.random.normal(
        keys[k], (4 * embedding_dim, embedding_dim), jnp.float32)
    # BatchNorm2d(E, eps=1e-3) parameters + running stats (eval mode).
    params["bn_gamma"] = 1.0 + 0.1 * jax.random.normal(keys[k + 1], (embedding_dim,), jnp.float32)
    params["bn_beta"] = 0.1 * jax.random.normal(keys[k + 2], (embedding_dim,), jnp.float32)
    params["bn_mean"] = 0.1 * jax.random.normal(keys[k + 3], (embedding_dim,), jnp.float32)
    params["bn_var"] = jnp.abs(1.0 + 0.1 * jax.random.normal(keys[k + 4], (embedding_dim,), jnp.float32))
    return params


# ----------------------------------------------------------------------------
# SegFormerHead forward
# ----------------------------------------------------------------------------
def segformer_head_forward(inputs_nchw, params, embedding_dim, bn_eps=1e-3):
    """inputs_nchw: [c1, c2, c3, c4], each (N, Ci, Hi, Wi). Returns (N, E, H1, W1)."""
    c1, c2, c3, c4 = inputs_nchw
    n = c1.shape[0]
    out_h, out_w = c1.shape[2], c1.shape[3]
    e = embedding_dim

    # Per-level MLP projection (+ resize to c1 resolution), concat order [c4,c3,c2,c1].
    resized_tokens = []
    for idx, x in ((3, c4), (2, c3), (1, c2), (0, c1)):
        _, ci, h, w = x.shape
        x_nhwc = jnp.transpose(x, (0, 2, 3, 1))               # N,H,W,C
        tokens = x_nhwc.reshape(n * h * w, ci)                # (M_i, Ci)
        proj = mlp_project(tokens, params[f"proj_w{idx}"], params[f"proj_b{idx}"])
        proj = proj.reshape(n, h, w, e)                       # bf16
        if (h, w) != (out_h, out_w):
            proj = _bilinear_resize_nhwc(proj, out_h, out_w)
        resized_tokens.append(proj.reshape(n * out_h * out_w, e))

    # Split the (4E, E) fuse weight into per-level (E, E) blocks in concat order.
    fuse_w = params["fuse_w"]
    w_blocks = [fuse_w[i * e:(i + 1) * e] for i in range(4)]  # [c4, c3, c2, c1]

    # Fold eval-mode BatchNorm into per-channel scale/bias after the 1x1 conv.
    bn_scale = params["bn_gamma"] / jnp.sqrt(params["bn_var"] + bn_eps)
    bn_bias = params["bn_beta"] - params["bn_mean"] * bn_scale

    fused = fused_conv_bn_relu(resized_tokens, w_blocks, bn_scale, bn_bias)
    fused = fused.reshape(n, out_h, out_w, e)
    # TODO(synk): consumers that accept NHWC could skip this transpose (extra HBM pass).
    return jnp.transpose(fused, (0, 3, 1, 2))                 # NCHW, f32


# ----------------------------------------------------------------------------
# Pure-JAX f32 reference (same math, no Pallas / no bf16) for correctness.
# ----------------------------------------------------------------------------
def _reference_forward(inputs_nchw, params, embedding_dim, bn_eps=1e-3):
    c1 = inputs_nchw[0]
    n = c1.shape[0]
    out_h, out_w = c1.shape[2], c1.shape[3]
    e = embedding_dim
    feats = []
    for idx, x in ((3, inputs_nchw[3]), (2, inputs_nchw[2]),
                   (1, inputs_nchw[1]), (0, inputs_nchw[0])):
        _, ci, h, w = x.shape
        x_nhwc = jnp.transpose(x, (0, 2, 3, 1))
        p = x_nhwc.reshape(n * h * w, ci) @ params[f"proj_w{idx}"] + params[f"proj_b{idx}"]
        p = p.reshape(n, h, w, e)
        if (h, w) != (out_h, out_w):
            p = _bilinear_resize_nhwc(p, out_h, out_w)
        feats.append(p)
    fused_in = jnp.concatenate(feats, axis=-1).reshape(n * out_h * out_w, 4 * e)
    conv = fused_in @ params["fuse_w"]
    scale = params["bn_gamma"] / jnp.sqrt(params["bn_var"] + bn_eps)
    bias = params["bn_beta"] - params["bn_mean"] * scale
    out = jnp.maximum(conv * scale + bias, 0.0)
    return jnp.transpose(out.reshape(n, out_h, out_w, e), (0, 3, 1, 2))


if __name__ == "__main__":
    # Small, module-consistent pyramid shapes (strides 4/8/16/32 style).
    in_channels = [16, 32, 64, 128]
    embedding_dim = 128
    N = 2
    spatial = [(16, 16), (8, 8), (4, 4), (2, 2)]  # c1, c2, c3, c4

    key = jax.random.PRNGKey(0)
    k_in, k_par = jax.random.split(key)
    in_keys = jax.random.split(k_in, 4)
    inputs = [
        jax.random.normal(in_keys[i], (N, in_channels[i], *spatial[i]), jnp.float32)
        for i in range(4)
    ]
    params = make_params(in_channels, embedding_dim, k_par)

    out = segformer_head_forward(inputs, params, embedding_dim)
    out = jax.block_until_ready(out)

    ref = jax.block_until_ready(_reference_forward(inputs, params, embedding_dim))
    assert out.shape == (N, embedding_dim, spatial[0][0], spatial[0][1]), out.shape
    # bf16 matmul path vs f32 reference: loose but meaningful tolerance.
    np.testing.assert_allclose(np.asarray(out), np.asarray(ref), rtol=2e-2, atol=2e-2)

    print("KERNEL_OK")
</pallas_src>

<mosaic_0001>
module attributes {stable_mosaic.version = 11 : i64} {
  func.func @_proj_kernel(%arg0: i32, %arg1: memref<8x128xbf16, #tpu.memory_space<vmem>>, %arg2: memref<128x128xbf16, #tpu.memory_space<vmem>>, %arg3: memref<1x128xf32, #tpu.memory_space<vmem>>, %arg4: memref<8x128xbf16, #tpu.memory_space<vmem>>) attributes {dimension_semantics = [#tpu.dimension_semantics<parallel>], iteration_bounds = array<i64: 1>, scalar_prefetch = 0 : i64, scratch_operands = 0 : i64, tpu.core_type = #tpu.core_type<tc>, window_params = [{transform_indices = @transform_0, window_bounds = array<i64: 8, 128>}, {pipeline_mode = #tpu.pipeline_mode<synchronous>, transform_indices = @transform_1, window_bounds = array<i64: 128, 128>}, {pipeline_mode = #tpu.pipeline_mode<synchronous>, transform_indices = @transform_2, window_bounds = array<i64: 1, 128>}, {transform_indices = @transform_3, window_bounds = array<i64: 8, 128>}]} {
    %c0 = arith.constant 0 : index
    %c0_0 = arith.constant 0 : index
    %0 = vector.load %arg1[%c0, %c0_0] : memref<8x128xbf16, #tpu.memory_space<vmem>>, vector<8x128xbf16>
    %c0_1 = arith.constant 0 : index
    %c0_2 = arith.constant 0 : index
    %1 = vector.load %arg2[%c0_1, %c0_2] : memref<128x128xbf16, #tpu.memory_space<vmem>>, vector<128x128xbf16>
    %cst = arith.constant dense<0.000000e+00> : vector<8x128xf32>
    %2 = tpu.matmul %0, %1, %cst {dimension_numbers = #tpu.dot_dimension_numbers<[1], [0], [0], [1], [0, 0, 1, 1], [], []>} : vector<8x128xbf16>, vector<128x128xbf16>, vector<8x128xf32> -> vector<8x128xf32>
    %c0_3 = arith.constant 0 : index
    %c0_4 = arith.constant 0 : index
    %3 = vector.load %arg3[%c0_3, %c0_4] : memref<1x128xf32, #tpu.memory_space<vmem>>, vector<1x128xf32>
    %4 = vector.broadcast %3 : vector<1x128xf32> to vector<8x128xf32>
    %5 = arith.addf %2, %4 : vector<8x128xf32>
    %6 = arith.truncf %5 : vector<8x128xf32> to vector<8x128xbf16>
    %c0_5 = arith.constant 0 : index
    %c0_6 = arith.constant 0 : index
    %7 = vector.load %arg4[%c0_5, %c0_6] : memref<8x128xbf16, #tpu.memory_space<vmem>>, vector<8x128xbf16>
    tpu.vector_store %arg4[%c0_5, %c0_6], %6 {strides = array<i32>} : memref<8x128xbf16, #tpu.memory_space<vmem>>, vector<8x128xbf16>,
    return
  }
  func.func @transform_0(%arg0: i32) -> (i32, i32) {
    %c0_i32 = arith.constant 0 : i32
    %c0_i32_0 = arith.constant 0 : i32
    return %arg0, %c0_i32 : i32, i32
  }
  func.func @transform_1(%arg0: i32) -> (i32, i32) {
    %c0_i32 = arith.constant 0 : i32
    %c0_i32_0 = arith.constant 0 : i32
    %c0_i32_1 = arith.constant 0 : i32
    return %c0_i32, %c0_i32_0 : i32, i32
  }
  func.func @transform_2(%arg0: i32) -> (i32, i32) {
    %c0_i32 = arith.constant 0 : i32
    %c0_i32_0 = arith.constant 0 : i32
    %c0_i32_1 = arith.constant 0 : i32
    return %c0_i32, %c0_i32_0 : i32, i32
  }
  func.func @transform_3(%arg0: i32) -> (i32, i32) {
    %c0_i32 = arith.constant 0 : i32
    %c0_i32_0 = arith.constant 0 : i32
    return %arg0, %c0_i32 : i32, i32
  }
}

</mosaic_0001>

<bundles_post_ra>
// kernel: tpu_custom_call.1
= control target key start
LH: loop header
LB: loop body
LE: loop exit
PB: predicated region body
PF: predicated region fallthrough
CT: control target
= control target key end

     0   :  { %8 = vsyncpa [#allocation3], 0  ;;  %s370_s0 = inlined_call_operand.hbm [shape: bf16[8,128], index: 0, kind: input, shape index: {}]   ;;  %s371_s1 = inlined_call_operand.hbm [shape: bf16[128,128], index: 1, kind: input, shape index: {}]   ;;  %s372_s2 = inlined_call_operand.vmem [shape: f32[1,128], index: 2, kind: input, shape index: {}]   ;;  %s373_s3 = inlined_call_operand.hbm [shape: bf16[8,128], index: 3, kind: output, shape index: {}]  }
   0x1   :  { %9 = vsyncpa [#allocation6], 0 }
   0x2   :  { %10 = vsyncpa [#allocation4], 0  ;;  %s297_s12 = smov [#allocation2]   ;;  %s298_s14 = smov [#allocation5]  }
   0x3   :  { %s17_s13 = sshll.u32 %s297_s12, 4  ;;  %s26_s15 = sshll.u32 %s298_s14, 4  ;;  %s18_s13 = int_to_ptr.vmem [resolvable:$true] %s17_s13  ;;  %s324_s15 = int_to_ptr.vmem [resolvable:$true] %s26_s15 }
   0x4   :  { %s225_s18 = scalar_lea.hbm %s370_s0, 64 }
   0x5   :  { %p226_p0 = scmp.ne.s32.totalorder %s370_s0, %s225_s18  ;;  %p229_p1 = scmp.lt.u32.totalorder %s225_s18, %s370_s0 }
   0x7   :  { %p231_p2 = pnand %p229_p1, %p226_p0 }
   0x9   :  { %234 = shalt.err (!%p231_p2)
}
   0xa   :  { %s235_s23 = scalar_lea.vmem %s18_s13, 64  ;;  %p240_p4 = scmp.lt.s32.totalorder %s18_s13, %s18_s13 }
   0xb   :  { %p236_p3 = scmp.ne.s32.totalorder %s18_s13, %s235_s23  ;;  %p241_p5 = scmp.lt.s32.totalorder %s235_s23, %s235_s23 }
   0xd   :  { %p242_p6 = por %p241_p5, %p240_p4 }
   0xf   :  { %p243_p7 = pnand %p242_p6, %p236_p3 }
  0x11   :  { %246 = shalt.err (!%p243_p7)
}
  0x12   :  { %20 = dma.hbm_to_vmem [thread:$0]  %s370_s0, 64, %s18_s13, [#allocation3]  }
  0x13   :  { %s247_s28 = scalar_lea.hbm %s371_s1, 1024 }
  0x14   :  { %p248_p8 = scmp.ne.s32.totalorder %s371_s1, %s247_s28  ;;  %p251_p9 = scmp.lt.u32.totalorder %s247_s28, %s371_s1 }
  0x16   :  { %p253_p10 = pnand %p251_p9, %p248_p8 }
  0x18   :  { %256 = shalt.err (!%p253_p10)
}
  0x19   :  { %s257_s6 = scalar_lea.vmem %s324_s15, 1024  ;;  %p262_p12 = scmp.lt.s32.totalorder %s324_s15, %s324_s15 }
  0x1a   :  { %p258_p11 = scmp.ne.s32.totalorder %s324_s15, %s257_s6  ;;  %p263_p13 = scmp.lt.s32.totalorder %s257_s6, %s257_s6 }
  0x1c   :  { %p264_p0 = por %p263_p13, %p262_p12 }
  0x1e   :  { %p265_p1 = pnand %p264_p0, %p258_p11 }
  0x20   :  { %268 = shalt.err (!%p265_p1)
}
  0x21   :  { %s299_s0 = smov 64   ;;  %s300_s7 = smov 4  }
  0x22   :  { %32 = dma.hbm_to_vmem [thread:$0]  %s371_s1, 1024, %s324_s15, [#allocation6], %s299_s0, %s299_s0, %s300_s7  }
  0x23   :  { %291 = dma.done.wait [#allocation3], 64  }
  0x24   :  { %292 = vsyncadd [#allocation3], 4294967232 }
  0x25   :  { %293 = dma.done.wait [#allocation6], 1024  }
  0x26   :  { %294 = vsyncadd [#allocation6], 4294966272  ;;  %v301_v0 = vmov 0.0   ;;  %vm302_vm0 = vmmov 0   ;;  %v217_v1 = vld [vmem:[#allocation5] sm:$0xff]   ;;  %v218_v2 = vld [vmem:[#allocation5 + $0x8] sm:$0xff]  }
  0x27   :  { %190 = vmatprep.subr.bf16.mxu0 %v301_v0  ;;  %206 = vmatprep.mubr.msk.bf16.mxu0 %vm302_vm0, %v301_v0  ;;  %v219_v3 = vld [vmem:[#allocation5 + $0x10] sm:$0xff]   ;;  %v220_v4 = vld [vmem:[#allocation5 + $0x18] sm:$0xff]   ;;  %v221_v5 = vld [vmem:[#allocation5 + $0x20] sm:$0xff]   ;;  %s303_s11 = smov [#allocation7]  }
  0x28   :  { %191 = vmatpush3.bf16.msra.mxu0 %v217_v1  ;;  %v222_v6 = vld [vmem:[#allocation5 + $0x28] sm:$0xff]   ;;  %v223_v7 = vld [vmem:[#allocation5 + $0x30] sm:$0xff]   ;;  %v224_v8 = vld [vmem:[#allocation5 + $0x38] sm:$0xff]   ;;  %s162_s12 = sshll.u32 %s303_s11, 4  ;;  %s163_s12 = int_to_ptr.vmem [resolvable:$true] %s162_s12 }
  0x29   :  { %192 = vmatprep.subr.bf16.mxu0 %v301_v0  ;;  %v42_v9 = vld [vmem:[#allocation2] sm:$0xf]  ;;  %s269_s13 = scalar_lea.vmem %s163_s12, 64  ;;  %p274_p3 = scmp.lt.s32.totalorder %s163_s12, %s163_s12 }
  0x2a   :  { %v172_v10 = vld [vmem:[%s372_s2] ss:$0 sm:$0xff]  ;;  %p270_p2 = scmp.ne.s32.totalorder %s163_s12, %s269_s13  ;;  %p275_p4 = scmp.lt.s32.totalorder %s269_s13, %s269_s13 }
  0x2c   :  { %193 = vmatpush3.bf16.msra.mxu0 %v218_v2  ;;  %p276_p5 = por %p275_p4, %p274_p3 }
  0x2d   :  { %194 = vmatprep.subr.bf16.mxu0 %v301_v0 }
  0x2e   :  { %p277_p6 = pnand %p276_p5, %p270_p2 }
  0x30   :  { %195 = vmatpush3.bf16.msra.mxu0 %v219_v3 }
  0x31   :  { %196 = vmatprep.subr.bf16.mxu0 %v301_v0 }
  0x34   :  { %197 = vmatpush3.bf16.msra.mxu0 %v220_v4 }
  0x35   :  { %198 = vmatprep.subr.bf16.mxu0 %v301_v0 }
  0x38   :  { %199 = vmatpush3.bf16.msra.mxu0 %v221_v5 }
  0x39   :  { %200 = vmatprep.subr.bf16.mxu0 %v301_v0 }
  0x3c   :  { %201 = vmatpush3.bf16.msra.mxu0 %v222_v6 }
  0x3d   :  { %202 = vmatprep.subr.bf16.mxu0 %v301_v0 }
  0x40   :  { %203 = vmatpush3.bf16.msra.mxu0 %v223_v7 }
  0x41   :  { %204 = vmatprep.subr.bf16.mxu0 %v301_v0 }
  0x44   :  { %205 = vmatpush3.bf16.msra.mxu0 %v224_v8 }
  0x47   :  { %207 = vmatmul.mubr.bf16.vlgmr.msra.gmra.mrb[0].mxu0 %v42_v9 }
 0x11a   :  { %v148_v11 = vpop.f32.mrb[0].mxu0 }
 0x11b   :  { %v149_v12 = vadd.f32 %v172_v10, %v148_v11  ;;  %v208_v13 = vpop.f32.mrb[1].mxu0 }
 0x11c   :  { %v151_v14 = vpop.f32.mrb[2].mxu0 }
 0x11d   :  { %v154_v15 = vpack.c.bf16 %v149_v12, %v149_v12  ;;  %v209_v16 = vpop.f32.mrb[3].mxu0 }
 0x11f   :  { %155 = vst [vmem:[#allocation7] sm:$0xf] %v154_v15 }
 0x120   :  { %280 = shalt.err (!%p277_p6)
}
 0x121   :  { %s281_s2 = scalar_lea.hbm %s373_s3, 64 }
 0x122   :  { %p282_p7 = scmp.ne.s32.totalorder %s373_s3, %s281_s2  ;;  %p285_p8 = scmp.lt.u32.totalorder %s281_s2, %s373_s3 }
 0x124   :  { %p287_p9 = pnand %p285_p8, %p282_p7 }
 0x126   :  { %290 = shalt.err (!%p287_p9)
}
 0x127   :  { %165 = dma.vmem_to_hbm [thread:$0]  %s163_s12, 64, %s373_s3, [#allocation4]  }
 0x128   :  { %295 = dma.done.wait [#allocation4], 64  }
 0x129   :  { %296 = vsyncadd [#allocation4], 4294967232 }
 0x12a   :  { %169 = vsyncpa [#allocation3], 1 }
 0x12b   :  { %170 = vsyncpa [#allocation6], 1 }
 0x12c   :  { %171 = vsyncpa [#allocation4], 1 }

</bundles_post_ra>
